<compile_context>
chip_gen: v7x
topology: tpu7x:2x2x1
jax: 0.10.0
libtpu: 0.0.40
codegen_flags: <defaults>
</compile_context>

<pallas_src>
import jax
import jax.numpy as jnp
import numpy as np
from jax.experimental import pallas as pl
from jax.experimental.pallas import tpu as pltpu

# ------------------------- configuration (small, matches module) -------------------------
B = 2          # batch
IN = 32        # decoder input feature size
H = 32         # rnn_sizes = [H, H]
T = 8          # encoder/context timesteps
C = 32         # ctx_size
P = 32         # ctx_proj_size  (== H == C in this config)
S = 6          # decode steps executed inside the kernel
SCALE_HT = 1.0
SCALE_CTX = 1.0
G = 4 * H      # gate width = 128 (lane-dense)

# packed weight slab A (lane width 128 = 4H): fused LSTM weights + biases, 8-row aligned
A_W0 = 0                    # (IN + P + H, 4H)  rows   0:96
A_B0 = 96                   # (1, 4H)
A_B1 = 104                  # (1, 4H)
A_W1 = 112                  # (2H, 4H)          rows 112:176
RA = 176
# packed weight slab B (lane width 32 = C = P): attention + context projection
B_WATT = 0                  # (H, C)            rows   0:32
B_WPROJ = 32                # (H + C, P)        rows  32:96  (scale_ht/scale_ctx folded in)
B_BPROJ = 96                # (1, P)
RB = 104

OUT_W = 128                 # packed output lanes: [dec_out(32) | ectx(32) | alpha(8) | pad]


# ------------------------------------- Pallas kernel -------------------------------------
def _decoder_kernel(dec_ref, dmask_ref, ctx_ref, cmask_ref, wa_ref, wb_ref,
                    out_ref, h0_ref, c0_ref, h1_ref, c1_ref, cp_ref):
    f32 = jnp.float32
    step = pl.program_id(0)

    # zero the recurrent state once, at the first decode step (post-reset semantics)
    @pl.when(step == 0)
    def _init():
        h0_ref[...] = jnp.zeros_like(h0_ref)
        c0_ref[...] = jnp.zeros_like(c0_ref)
        h1_ref[...] = jnp.zeros_like(h1_ref)
        c1_ref[...] = jnp.zeros_like(c1_ref)
        cp_ref[...] = jnp.zeros_like(cp_ref)

    x = dec_ref[0]                               # (B, IN)   current decode step
    dmask = dmask_ref[0]                         # (B, 1)
    dmask_b = jnp.broadcast_to(dmask, (B, H))    # hoisted broadcast (H == P here)

    h0 = h0_ref[...]; c0 = c0_ref[...]
    h1 = h1_ref[...]; c1 = c1_ref[...]
    cp = cp_ref[...]

    def lstm_gates(gates, c_prev):
        i = jax.nn.sigmoid(gates[:, 0:H])
        f = jax.nn.sigmoid(gates[:, H:2 * H])
        g = jnp.tanh(gates[:, 2 * H:3 * H])
        o = jax.nn.sigmoid(gates[:, 3 * H:4 * H])
        c_new = f * c_prev + i * g
        h_new = o * jnp.tanh(c_new)
        return h_new, c_new

    # ---- layer 0 LSTM: single fused dot on concat([x, ctx_proj_prev, h0]) ----
    w0 = wa_ref[A_W0:A_W0 + IN + P + H, :]                 # (IN+P+H, 4H)
    b0 = wa_ref[A_B0:A_B0 + 1, :]                          # (1, 4H)
    xin0 = jnp.concatenate([x, cp, h0], axis=-1)           # (B, IN+P+H)
    gates0 = jnp.dot(xin0, w0, preferred_element_type=f32) + b0
    h0_new, c0_new = lstm_gates(gates0, c0)
    res0 = h0_new * dmask_b            # dec_mask; dropout is identity in eval mode

    # ---- layer 1 LSTM: single fused dot on concat([res0, h1]) ----
    w1 = wa_ref[A_W1:A_W1 + 2 * H, :]                      # (2H, 4H)
    b1 = wa_ref[A_B1:A_B1 + 1, :]                          # (1, 4H)
    xin1 = jnp.concatenate([res0, h1], axis=-1)            # (B, 2H)
    gates1 = jnp.dot(xin1, w1, preferred_element_type=f32) + b1
    h1_new, c1_new = lstm_gates(gates1, c1)
    h_t = h1_new * dmask_b                                 # (B, H)

    # ---- bilinear attention with masked softmax over T (reductions on the MXU) ----
    ctx = ctx_ref[...]                                     # (B, T, C)  resident
    cmask = cmask_ref[...]                                 # (B, T)     resident
    w_att = wb_ref[B_WATT:B_WATT + H, :]                   # (H, C)
    q = jnp.dot(h_t, w_att, preferred_element_type=f32)    # (B, C)
    scores = jnp.einsum('buc,btc->but', q[:, None, :], ctx,
                        preferred_element_type=f32)[:, 0, :]      # (B, T)
    scores = jnp.where(cmask > 0, scores, f32(-1e30))
    m = jnp.max(scores, axis=-1, keepdims=True)
    e = jnp.exp(scores - m) * cmask
    denom = jnp.sum(e, axis=-1, keepdims=True)
    alpha = e / denom                                      # (B, T)
    ectx = jnp.einsum('but,btc->buc', alpha[:, None, :], ctx,
                      preferred_element_type=f32)[:, 0, :]        # (B, C)

    # ---- context projection: tanh(concat([h_t, ectx]) @ W_proj + b), scales folded ----
    w_proj = wb_ref[B_WPROJ:B_WPROJ + H + C, :]            # (H+C, P)
    b_proj = wb_ref[B_BPROJ:B_BPROJ + 1, :]                # (1, P)
    xin2 = jnp.concatenate([h_t, ectx], axis=-1)           # (B, H+C)
    dec_out = jnp.tanh(jnp.dot(xin2, w_proj, preferred_element_type=f32) + b_proj)
    dec_out = dec_out * dmask_b                            # (B, P)

    # ---- carry recurrent state to the next decode step ----
    h0_ref[...] = h0_new
    c0_ref[...] = c0_new
    h1_ref[...] = h1_new
    c1_ref[...] = c1_new
    cp_ref[...] = dec_out                                  # input feeding

    # ---- single lane-dense packed store: [dec_out | ectx | alpha | zero pad] ----
    pad = jnp.zeros((B, OUT_W - P - C - T), f32)
    out_ref[0] = jnp.concatenate([dec_out, ectx, alpha, pad], axis=-1)


# ------------------------------------ host-side packing ----------------------------------
def _pack_params(params):
    f32 = jnp.float32
    slab_a = jnp.zeros((RA, G), f32)
    w0 = jnp.concatenate([params["w_ih0_x"], params["w_ih0_f"], params["w_hh0"]], axis=0)
    w1 = jnp.concatenate([params["w_ih1"], params["w_hh1"]], axis=0)
    slab_a = slab_a.at[A_W0:A_W0 + IN + P + H].set(w0)
    slab_a = slab_a.at[A_B0:A_B0 + 1].set(params["b0"])
    slab_a = slab_a.at[A_B1:A_B1 + 1].set(params["b1"])
    slab_a = slab_a.at[A_W1:A_W1 + 2 * H].set(w1)

    slab_b = jnp.zeros((RB, P), f32)
    w_proj = jnp.concatenate([params["w_proj_h"] * SCALE_HT,
                              params["w_proj_c"] * SCALE_CTX], axis=0)
    slab_b = slab_b.at[B_WATT:B_WATT + H].set(params["w_att"])
    slab_b = slab_b.at[B_WPROJ:B_WPROJ + H + C].set(w_proj)
    slab_b = slab_b.at[B_BPROJ:B_BPROJ + 1].set(params["b_proj"])
    return slab_a, slab_b


def standard_decoder_forward(dec_inputs, dec_masks, ctx, ctx_mask, params):
    """Runs S decoder steps (starting from reset() state) inside a single Pallas kernel."""
    slab_a, slab_b = _pack_params(params)
    n_steps = dec_inputs.shape[0]

    grid_spec = pltpu.PrefetchScalarGridSpec(
        num_scalar_prefetch=0,
        grid=(n_steps,),
        in_specs=[
            pl.BlockSpec((1, B, IN), lambda s: (s, 0, 0)),   # per-step decoder input
            pl.BlockSpec((1, B, 1), lambda s: (s, 0, 0)),    # per-step decoder mask
            pl.BlockSpec((B, T, C), lambda s: (0, 0, 0)),    # context (resident)
            pl.BlockSpec((B, T), lambda s: (0, 0)),          # context mask (resident)
            pl.BlockSpec((RA, G), lambda s: (0, 0)),         # weight slab A (resident)
            pl.BlockSpec((RB, P), lambda s: (0, 0)),         # weight slab B (resident)
        ],
        out_specs=pl.BlockSpec((1, B, OUT_W), lambda s: (s, 0, 0)),
        scratch_shapes=[
            pltpu.VMEM((B, H), jnp.float32),   # h0
            pltpu.VMEM((B, H), jnp.float32),   # c0
            pltpu.VMEM((B, H), jnp.float32),   # h1
            pltpu.VMEM((B, H), jnp.float32),   # c1
            pltpu.VMEM((B, P), jnp.float32),   # ctx_proj_prev
        ],
    )

    packed = pl.pallas_call(
        _decoder_kernel,
        out_shape=jax.ShapeDtypeStruct((n_steps, B, OUT_W), jnp.float32),
        grid_spec=grid_spec,
        compiler_params=pltpu.CompilerParams(
            dimension_semantics=("arbitrary",)),   # sequential state-carrying decode loop
    )(dec_inputs, dec_masks, ctx, ctx_mask, slab_a, slab_b)

    dec_out = packed[:, :, 0:P]
    ectx = packed[:, :, P:P + C]
    alpha = packed[:, :, P + C:P + C + T]
    return {"dec_output": dec_out,
            "att_output": {"p_ctx": alpha, "expected_ctx": ectx}}


# ---------------------------------- pure-JAX reference -----------------------------------
def reference_forward(dec_inputs, dec_masks, ctx, ctx_mask, params):
    def lstm(gates, c):
        i = jax.nn.sigmoid(gates[:, 0:H]); f = jax.nn.sigmoid(gates[:, H:2 * H])
        g = jnp.tanh(gates[:, 2 * H:3 * H]); o = jax.nn.sigmoid(gates[:, 3 * H:4 * H])
        c_new = f * c + i * g
        return o * jnp.tanh(c_new), c_new

    h0 = jnp.zeros((B, H)); c0 = jnp.zeros((B, H))
    h1 = jnp.zeros((B, H)); c1 = jnp.zeros((B, H))
    cp = jnp.zeros((B, P))
    outs, alphas, ectxs = [], [], []
    for s in range(dec_inputs.shape[0]):
        x, dmask = dec_inputs[s], dec_masks[s]
        g0 = (x @ params["w_ih0_x"] + cp @ params["w_ih0_f"]
              + h0 @ params["w_hh0"] + params["b0"])
        h0, c0 = lstm(g0, c0)
        res0 = h0 * dmask
        g1 = res0 @ params["w_ih1"] + h1 @ params["w_hh1"] + params["b1"]
        h1, c1 = lstm(g1, c1)
        h_t = h1 * dmask
        q = h_t @ params["w_att"]
        scores = jnp.einsum("bc,btc->bt", q, ctx)
        scores = jnp.where(ctx_mask > 0, scores, -1e30)
        e = jnp.exp(scores - scores.max(-1, keepdims=True)) * ctx_mask
        alpha = e / e.sum(-1, keepdims=True)
        ectx = jnp.einsum("bt,btc->bc", alpha, ctx)
        dec_out = jnp.tanh(h_t * SCALE_HT @ params["w_proj_h"]
                           + ectx * SCALE_CTX @ params["w_proj_c"]
                           + params["b_proj"]) * dmask
        cp = dec_out
        outs.append(dec_out); alphas.append(alpha); ectxs.append(ectx)
    return jnp.stack(outs), jnp.stack(alphas), jnp.stack(ectxs)


# -------------------------------------------- main ---------------------------------------
def _init_params(key):
    ks = jax.random.split(key, 12)

    def u(k, shape, fan_in):
        bound = 1.0 / np.sqrt(fan_in)
        return jax.random.uniform(k, shape, jnp.float32, -bound, bound)

    # LSTM weights stored pre-transposed: (fan_in, 4H); bias = b_ih + b_hh folded.
    return {
        "w_ih0_x": u(ks[0], (IN, 4 * H), IN + P),
        "w_ih0_f": u(ks[1], (P, 4 * H), IN + P),
        "w_hh0":   u(ks[2], (H, 4 * H), H),
        "b0":      u(ks[3], (1, 4 * H), H) + u(ks[4], (1, 4 * H), H),
        "w_ih1":   u(ks[5], (H, 4 * H), H),
        "w_hh1":   u(ks[6], (H, 4 * H), H),
        "b1":      u(ks[7], (1, 4 * H), H) + u(ks[8], (1, 4 * H), H),
        "w_att":   u(ks[9], (H, C), H),
        "w_proj_h": u(ks[10], (H, P), H + C),
        "w_proj_c": u(ks[11], (C, P), H + C),
        "b_proj":  jnp.zeros((1, P), jnp.float32),
    }


if __name__ == "__main__":
    key = jax.random.PRNGKey(0)
    k_in, k_ctx, k_par = jax.random.split(key, 3)

    dec_inputs = jax.random.normal(k_in, (S, B, IN), jnp.float32)
    ctx = jax.random.normal(k_ctx, (B, T, C), jnp.float32)
    dec_masks = jnp.ones((S, B, 1), jnp.float32).at[3, 1, 0].set(0.0)
    ctx_mask = jnp.array([[1, 1, 1, 1, 1, 1, 1, 1],
                          [1, 1, 1, 1, 1, 0, 0, 0]], jnp.float32)
    params = _init_params(k_par)

    out = standard_decoder_forward(dec_inputs, dec_masks, ctx, ctx_mask, params)
    jax.block_until_ready(out)

    ref_dec, ref_alpha, ref_ectx = reference_forward(dec_inputs, dec_masks, ctx, ctx_mask, params)
    np.testing.assert_allclose(np.asarray(out["dec_output"]), np.asarray(ref_dec),
                               rtol=2e-3, atol=2e-3)
    np.testing.assert_allclose(np.asarray(out["att_output"]["p_ctx"]), np.asarray(ref_alpha),
                               rtol=2e-3, atol=2e-3)
    np.testing.assert_allclose(np.asarray(out["att_output"]["expected_ctx"]), np.asarray(ref_ectx),
                               rtol=2e-3, atol=2e-3)
    print("KERNEL_OK")
</pallas_src>

<mosaic_0001>
module attributes {stable_mosaic.version = 11 : i64} {
  func.func @_decoder_kernel(%arg0: i32, %arg1: memref<1x2x32xf32, #tpu.memory_space<vmem>>, %arg2: memref<1x2x1xf32, #tpu.memory_space<vmem>>, %arg3: memref<2x8x32xf32, #tpu.memory_space<vmem>>, %arg4: memref<2x8xf32, #tpu.memory_space<vmem>>, %arg5: memref<176x128xf32, #tpu.memory_space<vmem>>, %arg6: memref<104x32xf32, #tpu.memory_space<vmem>>, %arg7: memref<1x2x128xf32, #tpu.memory_space<vmem>>, %arg8: memref<2x32xf32, #tpu.memory_space<vmem>>, %arg9: memref<2x32xf32, #tpu.memory_space<vmem>>, %arg10: memref<2x32xf32, #tpu.memory_space<vmem>>, %arg11: memref<2x32xf32, #tpu.memory_space<vmem>>, %arg12: memref<2x32xf32, #tpu.memory_space<vmem>>) attributes {dimension_semantics = [#tpu.dimension_semantics<arbitrary>], iteration_bounds = array<i64: 6>, scalar_prefetch = 0 : i64, scratch_operands = 5 : i64, tpu.core_type = #tpu.core_type<tc>, window_params = [{transform_indices = @transform_0, window_bounds = array<i64: 1, 2, 32>}, {transform_indices = @transform_1, window_bounds = array<i64: 1, 2, 1>}, {pipeline_mode = #tpu.pipeline_mode<synchronous>, transform_indices = @transform_2, window_bounds = array<i64: 2, 8, 32>}, {pipeline_mode = #tpu.pipeline_mode<synchronous>, transform_indices = @transform_3, window_bounds = array<i64: 2, 8>}, {pipeline_mode = #tpu.pipeline_mode<synchronous>, transform_indices = @transform_4, window_bounds = array<i64: 176, 128>}, {pipeline_mode = #tpu.pipeline_mode<synchronous>, transform_indices = @transform_5, window_bounds = array<i64: 104, 32>}, {transform_indices = @transform_6, window_bounds = array<i64: 1, 2, 128>}]} {
    %c0_i32 = arith.constant 0 : i32
    %0 = arith.cmpi eq, %arg0, %c0_i32 : i32
    %1 = arith.extui %0 : i1 to i32
    %c0_i32_0 = arith.constant 0 : i32
    %2 = arith.cmpi ne, %1, %c0_i32_0 : i32
    scf.if %2 {
      %cst_60 = arith.constant 0.000000e+00 : f32
      %120 = vector.broadcast %cst_60 : f32 to vector<2x32xf32>
      %c0_61 = arith.constant 0 : index
      %c0_62 = arith.constant 0 : index
      %121 = vector.load %arg8[%c0_61, %c0_62] : memref<2x32xf32, #tpu.memory_space<vmem>>, vector<2x32xf32>
      tpu.vector_store %arg8[%c0_61, %c0_62], %120 {strides = array<i32>} : memref<2x32xf32, #tpu.memory_space<vmem>>, vector<2x32xf32>,
      %cst_63 = arith.constant 0.000000e+00 : f32
      %122 = vector.broadcast %cst_63 : f32 to vector<2x32xf32>
      %c0_64 = arith.constant 0 : index
      %c0_65 = arith.constant 0 : index
      %123 = vector.load %arg9[%c0_64, %c0_65] : memref<2x32xf32, #tpu.memory_space<vmem>>, vector<2x32xf32>
      tpu.vector_store %arg9[%c0_64, %c0_65], %122 {strides = array<i32>} : memref<2x32xf32, #tpu.memory_space<vmem>>, vector<2x32xf32>,
      %cst_66 = arith.constant 0.000000e+00 : f32
      %124 = vector.broadcast %cst_66 : f32 to vector<2x32xf32>
      %c0_67 = arith.constant 0 : index
      %c0_68 = arith.constant 0 : index
      %125 = vector.load %arg10[%c0_67, %c0_68] : memref<2x32xf32, #tpu.memory_space<vmem>>, vector<2x32xf32>
      tpu.vector_store %arg10[%c0_67, %c0_68], %124 {strides = array<i32>} : memref<2x32xf32, #tpu.memory_space<vmem>>, vector<2x32xf32>,
      %cst_69 = arith.constant 0.000000e+00 : f32
      %126 = vector.broadcast %cst_69 : f32 to vector<2x32xf32>
      %c0_70 = arith.constant 0 : index
      %c0_71 = arith.constant 0 : index
      %127 = vector.load %arg11[%c0_70, %c0_71] : memref<2x32xf32, #tpu.memory_space<vmem>>, vector<2x32xf32>
      tpu.vector_store %arg11[%c0_70, %c0_71], %126 {strides = array<i32>} : memref<2x32xf32, #tpu.memory_space<vmem>>, vector<2x32xf32>,
      %cst_72 = arith.constant 0.000000e+00 : f32
      %128 = vector.broadcast %cst_72 : f32 to vector<2x32xf32>
      %c0_73 = arith.constant 0 : index
      %c0_74 = arith.constant 0 : index
      %129 = vector.load %arg12[%c0_73, %c0_74] : memref<2x32xf32, #tpu.memory_space<vmem>>, vector<2x32xf32>
      tpu.vector_store %arg12[%c0_73, %c0_74], %128 {strides = array<i32>} : memref<2x32xf32, #tpu.memory_space<vmem>>, vector<2x32xf32>,
    } else {
    }
    %c0 = arith.constant 0 : index
    %c0_1 = arith.constant 0 : index
    %c0_2 = arith.constant 0 : index
    %3 = vector.load %arg1[%c0, %c0_1, %c0_2] : memref<1x2x32xf32, #tpu.memory_space<vmem>>, vector<1x2x32xf32>
    %4 = vector.shape_cast %3 : vector<1x2x32xf32> to vector<2x32xf32>
    %c0_3 = arith.constant 0 : index
    %c0_4 = arith.constant 0 : index
    %c0_5 = arith.constant 0 : index
    %5 = vector.load %arg2[%c0_3, %c0_4, %c0_5] : memref<1x2x1xf32, #tpu.memory_space<vmem>>, vector<1x2x1xf32>
    %6 = vector.shape_cast %5 : vector<1x2x1xf32> to vector<2x1xf32>
    %7 = vector.shape_cast %6 : vector<2x1xf32> to vector<2x1xf32>
    %8 = vector.broadcast %7 : vector<2x1xf32> to vector<2x32xf32>
    %c0_6 = arith.constant 0 : index
    %c0_7 = arith.constant 0 : index
    %9 = vector.load %arg8[%c0_6, %c0_7] : memref<2x32xf32, #tpu.memory_space<vmem>>, vector<2x32xf32>
    %c0_8 = arith.constant 0 : index
    %c0_9 = arith.constant 0 : index
    %10 = vector.load %arg9[%c0_8, %c0_9] : memref<2x32xf32, #tpu.memory_space<vmem>>, vector<2x32xf32>
    %c0_10 = arith.constant 0 : index
    %c0_11 = arith.constant 0 : index
    %11 = vector.load %arg10[%c0_10, %c0_11] : memref<2x32xf32, #tpu.memory_space<vmem>>, vector<2x32xf32>
    %c0_12 = arith.constant 0 : index
    %c0_13 = arith.constant 0 : index
    %12 = vector.load %arg11[%c0_12, %c0_13] : memref<2x32xf32, #tpu.memory_space<vmem>>, vector<2x32xf32>
    %c0_14 = arith.constant 0 : index
    %c0_15 = arith.constant 0 : index
    %13 = vector.load %arg12[%c0_14, %c0_15] : memref<2x32xf32, #tpu.memory_space<vmem>>, vector<2x32xf32>
    %c0_16 = arith.constant 0 : index
    %c0_17 = arith.constant 0 : index
    %14 = vector.load %arg5[%c0_16, %c0_17] : memref<176x128xf32, #tpu.memory_space<vmem>>, vector<96x128xf32>
    %c96 = arith.constant 96 : index
    %c0_18 = arith.constant 0 : index
    %15 = vector.load %arg5[%c96, %c0_18] : memref<176x128xf32, #tpu.memory_space<vmem>>, vector<1x128xf32>
    %16 = tpu.concatenate %4, %13, %9 in 1 : vector<2x32xf32>, vector<2x32xf32>, vector<2x32xf32> -> vector<2x96xf32>
    %cst = arith.constant dense<0.000000e+00> : vector<2x128xf32>
    %17 = tpu.matmul %16, %14, %cst {dimension_numbers = #tpu.dot_dimension_numbers<[1], [0], [0], [1], [0, 0, 1, 1], [], []>} : vector<2x96xf32>, vector<96x128xf32>, vector<2x128xf32> -> vector<2x128xf32>
    %18 = vector.broadcast %15 : vector<1x128xf32> to vector<2x128xf32>
    %19 = arith.addf %17, %18 : vector<2x128xf32>
    %20 = vector.extract_strided_slice %19 {offsets = [0, 0], sizes = [2, 32], strides = [1, 1]} : vector<2x128xf32> to vector<2x32xf32>
    %21 = arith.negf %20 : vector<2x32xf32>
    %22 = math.exp %21 : vector<2x32xf32>
    %cst_19 = arith.constant 1.000000e+00 : f32
    %23 = vector.broadcast %cst_19 : f32 to vector<2x32xf32>
    %24 = arith.addf %23, %22 : vector<2x32xf32>
    %25 = arith.divf %23, %24 : vector<2x32xf32>
    %26 = vector.extract_strided_slice %19 {offsets = [0, 32], sizes = [2, 32], strides = [1, 1]} : vector<2x128xf32> to vector<2x32xf32>
    %27 = arith.negf %26 : vector<2x32xf32>
    %28 = math.exp %27 : vector<2x32xf32>
    %cst_20 = arith.constant 1.000000e+00 : f32
    %29 = vector.broadcast %cst_20 : f32 to vector<2x32xf32>
    %30 = arith.addf %29, %28 : vector<2x32xf32>
    %31 = arith.divf %29, %30 : vector<2x32xf32>
    %32 = vector.extract_strided_slice %19 {offsets = [0, 64], sizes = [2, 32], strides = [1, 1]} : vector<2x128xf32> to vector<2x32xf32>
    %33 = math.tanh %32 : vector<2x32xf32>
    %34 = vector.extract_strided_slice %19 {offsets = [0, 96], sizes = [2, 32], strides = [1, 1]} : vector<2x128xf32> to vector<2x32xf32>
    %35 = arith.negf %34 : vector<2x32xf32>
    %36 = math.exp %35 : vector<2x32xf32>
    %cst_21 = arith.constant 1.000000e+00 : f32
    %37 = vector.broadcast %cst_21 : f32 to vector<2x32xf32>
    %38 = arith.addf %37, %36 : vector<2x32xf32>
    %39 = arith.divf %37, %38 : vector<2x32xf32>
    %40 = arith.mulf %31, %10 : vector<2x32xf32>
    %41 = arith.mulf %25, %33 : vector<2x32xf32>
    %42 = arith.addf %40, %41 : vector<2x32xf32>
    %43 = math.tanh %42 : vector<2x32xf32>
    %44 = arith.mulf %39, %43 : vector<2x32xf32>
    %45 = arith.mulf %44, %8 : vector<2x32xf32>
    %c112 = arith.constant 112 : index
    %c0_22 = arith.constant 0 : index
    %46 = vector.load %arg5[%c112, %c0_22] : memref<176x128xf32, #tpu.memory_space<vmem>>, vector<64x128xf32>
    %c104 = arith.constant 104 : index
    %c0_23 = arith.constant 0 : index
    %47 = vector.load %arg5[%c104, %c0_23] : memref<176x128xf32, #tpu.memory_space<vmem>>, vector<1x128xf32>
    %48 = tpu.concatenate %45, %11 in 1 : vector<2x32xf32>, vector<2x32xf32> -> vector<2x64xf32>
    %cst_24 = arith.constant dense<0.000000e+00> : vector<2x128xf32>
    %49 = tpu.matmul %48, %46, %cst_24 {dimension_numbers = #tpu.dot_dimension_numbers<[1], [0], [0], [1], [0, 0, 1, 1], [], []>} : vector<2x64xf32>, vector<64x128xf32>, vector<2x128xf32> -> vector<2x128xf32>
    %50 = vector.broadcast %47 : vector<1x128xf32> to vector<2x128xf32>
    %51 = arith.addf %49, %50 : vector<2x128xf32>
    %52 = vector.extract_strided_slice %51 {offsets = [0, 0], sizes = [2, 32], strides = [1, 1]} : vector<2x128xf32> to vector<2x32xf32>
    %53 = arith.negf %52 : vector<2x32xf32>
    %54 = math.exp %53 : vector<2x32xf32>
    %cst_25 = arith.constant 1.000000e+00 : f32
    %55 = vector.broadcast %cst_25 : f32 to vector<2x32xf32>
    %56 = arith.addf %55, %54 : vector<2x32xf32>
    %57 = arith.divf %55, %56 : vector<2x32xf32>
    %58 = vector.extract_strided_slice %51 {offsets = [0, 32], sizes = [2, 32], strides = [1, 1]} : vector<2x128xf32> to vector<2x32xf32>
    %59 = arith.negf %58 : vector<2x32xf32>
    %60 = math.exp %59 : vector<2x32xf32>
    %cst_26 = arith.constant 1.000000e+00 : f32
    %61 = vector.broadcast %cst_26 : f32 to vector<2x32xf32>
    %62 = arith.addf %61, %60 : vector<2x32xf32>
    %63 = arith.divf %61, %62 : vector<2x32xf32>
    %64 = vector.extract_strided_slice %51 {offsets = [0, 64], sizes = [2, 32], strides = [1, 1]} : vector<2x128xf32> to vector<2x32xf32>
    %65 = math.tanh %64 : vector<2x32xf32>
    %66 = vector.extract_strided_slice %51 {offsets = [0, 96], sizes = [2, 32], strides = [1, 1]} : vector<2x128xf32> to vector<2x32xf32>
    %67 = arith.negf %66 : vector<2x32xf32>
    %68 = math.exp %67 : vector<2x32xf32>
    %cst_27 = arith.constant 1.000000e+00 : f32
    %69 = vector.broadcast %cst_27 : f32 to vector<2x32xf32>
    %70 = arith.addf %69, %68 : vector<2x32xf32>
    %71 = arith.divf %69, %70 : vector<2x32xf32>
    %72 = arith.mulf %63, %12 : vector<2x32xf32>
    %73 = arith.mulf %57, %65 : vector<2x32xf32>
    %74 = arith.addf %72, %73 : vector<2x32xf32>
    %75 = math.tanh %74 : vector<2x32xf32>
    %76 = arith.mulf %71, %75 : vector<2x32xf32>
    %77 = arith.mulf %76, %8 : vector<2x32xf32>
    %c0_28 = arith.constant 0 : index
    %c0_29 = arith.constant 0 : index
    %c0_30 = arith.constant 0 : index
    %78 = vector.load %arg3[%c0_28, %c0_29, %c0_30] : memref<2x8x32xf32, #tpu.memory_space<vmem>>, vector<2x8x32xf32>
    %c0_31 = arith.constant 0 : index
    %c0_32 = arith.constant 0 : index
    %79 = vector.load %arg4[%c0_31, %c0_32] : memref<2x8xf32, #tpu.memory_space<vmem>>, vector<2x8xf32>
    %c0_33 = arith.constant 0 : index
    %c0_34 = arith.constant 0 : index
    %80 = vector.load %arg6[%c0_33, %c0_34] : memref<104x32xf32, #tpu.memory_space<vmem>>, vector<32x32xf32>
    %cst_35 = arith.constant dense<0.000000e+00> : vector<2x32xf32>
    %81 = tpu.matmul %77, %80, %cst_35 {dimension_numbers = #tpu.dot_dimension_numbers<[1], [0], [0], [1], [0, 0, 1, 1], [], []>} : vector<2x32xf32>, vector<32x32xf32>, vector<2x32xf32> -> vector<2x32xf32>
    %82 = vector.shape_cast %81 : vector<2x32xf32> to vector<2x1x32xf32>
    "tpu.trace_start"() <{level = 10 : i32, message = "buc,btc->but"}> : () -> ()
    %cst_36 = arith.constant dense<0.000000e+00> : vector<2x1x8xf32>
    %83 = tpu.matmul %82, %78, %cst_36 {dimension_numbers = #tpu.dot_dimension_numbers<[2], [2], [1], [1], [0, 0, 0, 1, 1, 1], [0], [0]>} : vector<2x1x32xf32>, vector<2x8x32xf32>, vector<2x1x8xf32> -> vector<2x1x8xf32>
    "tpu.trace_stop"() : () -> ()
    %84 = vector.shape_cast %83 : vector<2x1x8xf32> to vector<2x8xf32>
    %cst_37 = arith.constant 0.000000e+00 : f32
    %85 = vector.broadcast %cst_37 : f32 to vector<2x8xf32>
    %86 = arith.cmpf ogt, %79, %85 : vector<2x8xf32>
    %cst_38 = arith.constant -1.000000e+30 : f32
    %87 = vector.broadcast %cst_38 : f32 to vector<2x8xf32>
    %88 = arith.select %86, %84, %87 : vector<2x8xi1>, vector<2x8xf32>
    %cst_39 = arith.constant dense<0xFF800000> : vector<2xf32>
    %89 = vector.multi_reduction <maximumf>, %88, %cst_39 [1] : vector<2x8xf32> to vector<2xf32>
    %90 = vector.shape_cast %89 : vector<2xf32> to vector<2x1xf32>
    %91 = vector.broadcast %90 : vector<2x1xf32> to vector<2x8xf32>
    %92 = arith.subf %88, %91 : vector<2x8xf32>
    %93 = math.exp %92 : vector<2x8xf32>
    %94 = arith.mulf %93, %79 : vector<2x8xf32>
    %cst_40 = arith.constant dense<0.000000e+00> : vector<2xf32>
    %95 = vector.multi_reduction <add>, %94, %cst_40 [1] : vector<2x8xf32> to vector<2xf32>
    %96 = vector.shape_cast %95 : vector<2xf32> to vector<2x1xf32>
    %97 = vector.broadcast %96 : vector<2x1xf32> to vector<2x8xf32>
    %98 = arith.divf %94, %97 : vector<2x8xf32>
    %99 = vector.shape_cast %98 : vector<2x8xf32> to vector<2x1x8xf32>
    "tpu.trace_start"() <{level = 10 : i32, message = "but,btc->buc"}> : () -> ()
    %cst_41 = arith.constant dense<0.000000e+00> : vector<2x1x32xf32>
    %100 = tpu.matmul %99, %78, %cst_41 {dimension_numbers = #tpu.dot_dimension_numbers<[2], [1], [1], [2], [0, 0, 0, 1, 1, 2], [0], [0]>} : vector<2x1x8xf32>, vector<2x8x32xf32>, vector<2x1x32xf32> -> vector<2x1x32xf32>
    "tpu.trace_stop"() : () -> ()
    %101 = vector.shape_cast %100 : vector<2x1x32xf32> to vector<2x32xf32>
    %c32 = arith.constant 32 : index
    %c0_42 = arith.constant 0 : index
    %102 = vector.load %arg6[%c32, %c0_42] : memref<104x32xf32, #tpu.memory_space<vmem>>, vector<64x32xf32>
    %c96_43 = arith.constant 96 : index
    %c0_44 = arith.constant 0 : index
    %103 = vector.load %arg6[%c96_43, %c0_44] : memref<104x32xf32, #tpu.memory_space<vmem>>, vector<1x32xf32>
    %104 = tpu.concatenate %77, %101 in 1 : vector<2x32xf32>, vector<2x32xf32> -> vector<2x64xf32>
    %cst_45 = arith.constant dense<0.000000e+00> : vector<2x32xf32>
    %105 = tpu.matmul %104, %102, %cst_45 {dimension_numbers = #tpu.dot_dimension_numbers<[1], [0], [0], [1], [0, 0, 1, 1], [], []>} : vector<2x64xf32>, vector<64x32xf32>, vector<2x32xf32> -> vector<2x32xf32>
    %106 = vector.broadcast %103 : vector<1x32xf32> to vector<2x32xf32>
    %107 = arith.addf %105, %106 : vector<2x32xf32>
    %108 = math.tanh %107 : vector<2x32xf32>
    %109 = arith.mulf %108, %8 : vector<2x32xf32>
    %c0_46 = arith.constant 0 : index
    %c0_47 = arith.constant 0 : index
    %110 = vector.load %arg8[%c0_46, %c0_47] : memref<2x32xf32, #tpu.memory_space<vmem>>, vector<2x32xf32>
    tpu.vector_store %arg8[%c0_46, %c0_47], %44 {strides = array<i32>} : memref<2x32xf32, #tpu.memory_space<vmem>>, vector<2x32xf32>,
    %c0_48 = arith.constant 0 : index
    %c0_49 = arith.constant 0 : index
    %111 = vector.load %arg9[%c0_48, %c0_49] : memref<2x32xf32, #tpu.memory_space<vmem>>, vector<2x32xf32>
    tpu.vector_store %arg9[%c0_48, %c0_49], %42 {strides = array<i32>} : memref<2x32xf32, #tpu.memory_space<vmem>>, vector<2x32xf32>,
    %c0_50 = arith.constant 0 : index
    %c0_51 = arith.constant 0 : index
    %112 = vector.load %arg10[%c0_50, %c0_51] : memref<2x32xf32, #tpu.memory_space<vmem>>, vector<2x32xf32>
    tpu.vector_store %arg10[%c0_50, %c0_51], %76 {strides = array<i32>} : memref<2x32xf32, #tpu.memory_space<vmem>>, vector<2x32xf32>,
    %c0_52 = arith.constant 0 : index
    %c0_53 = arith.constant 0 : index
    %113 = vector.load %arg11[%c0_52, %c0_53] : memref<2x32xf32, #tpu.memory_space<vmem>>, vector<2x32xf32>
    tpu.vector_store %arg11[%c0_52, %c0_53], %74 {strides = array<i32>} : memref<2x32xf32, #tpu.memory_space<vmem>>, vector<2x32xf32>,
    %c0_54 = arith.constant 0 : index
    %c0_55 = arith.constant 0 : index
    %114 = vector.load %arg12[%c0_54, %c0_55] : memref<2x32xf32, #tpu.memory_space<vmem>>, vector<2x32xf32>
    tpu.vector_store %arg12[%c0_54, %c0_55], %109 {strides = array<i32>} : memref<2x32xf32, #tpu.memory_space<vmem>>, vector<2x32xf32>,
    %cst_56 = arith.constant 0.000000e+00 : f32
    %115 = vector.broadcast %cst_56 : f32 to vector<2x56xf32>
    %116 = tpu.concatenate %109, %101, %98, %115 in 1 : vector<2x32xf32>, vector<2x32xf32>, vector<2x8xf32>, vector<2x56xf32> -> vector<2x128xf32>
    %c0_57 = arith.constant 0 : index
    %c0_58 = arith.constant 0 : index
    %c0_59 = arith.constant 0 : index
    %117 = vector.load %arg7[%c0_57, %c0_58, %c0_59] : memref<1x2x128xf32, #tpu.memory_space<vmem>>, vector<1x2x128xf32>
    %118 = vector.shape_cast %117 : vector<1x2x128xf32> to vector<2x128xf32>
    %119 = vector.shape_cast %116 : vector<2x128xf32> to vector<1x2x128xf32>
    tpu.vector_store %arg7[%c0_57, %c0_58, %c0_59], %119 {strides = array<i32>} : memref<1x2x128xf32, #tpu.memory_space<vmem>>, vector<1x2x128xf32>,
    return
  }
  func.func @transform_0(%arg0: i32) -> (i32, i32, i32) {
    %c0_i32 = arith.constant 0 : i32
    %c0_i32_0 = arith.constant 0 : i32
    %c0_i32_1 = arith.constant 0 : i32
    return %arg0, %c0_i32, %c0_i32_0 : i32, i32, i32
  }
  func.func @transform_1(%arg0: i32) -> (i32, i32, i32) {
    %c0_i32 = arith.constant 0 : i32
    %c0_i32_0 = arith.constant 0 : i32
    %c0_i32_1 = arith.constant 0 : i32
    return %arg0, %c0_i32, %c0_i32_0 : i32, i32, i32
  }
  func.func @transform_2(%arg0: i32) -> (i32, i32, i32) {
    %c0_i32 = arith.constant 0 : i32
    %c0_i32_0 = arith.constant 0 : i32
    %c0_i32_1 = arith.constant 0 : i32
    %c0_i32_2 = arith.constant 0 : i32
    return %c0_i32, %c0_i32_0, %c0_i32_1 : i32, i32, i32
  }
  func.func @transform_3(%arg0: i32) -> (i32, i32) {
    %c0_i32 = arith.constant 0 : i32
    %c0_i32_0 = arith.constant 0 : i32
    %c0_i32_1 = arith.constant 0 : i32
    return %c0_i32, %c0_i32_0 : i32, i32
  }
  func.func @transform_4(%arg0: i32) -> (i32, i32) {
    %c0_i32 = arith.constant 0 : i32
    %c0_i32_0 = arith.constant 0 : i32
    %c0_i32_1 = arith.constant 0 : i32
    return %c0_i32, %c0_i32_0 : i32, i32
  }
  func.func @transform_5(%arg0: i32) -> (i32, i32) {
    %c0_i32 = arith.constant 0 : i32
    %c0_i32_0 = arith.constant 0 : i32
    %c0_i32_1 = arith.constant 0 : i32
    return %c0_i32, %c0_i32_0 : i32, i32
  }
  func.func @transform_6(%arg0: i32) -> (i32, i32, i32) {
    %c0_i32 = arith.constant 0 : i32
    %c0_i32_0 = arith.constant 0 : i32
    %c0_i32_1 = arith.constant 0 : i32
    return %arg0, %c0_i32, %c0_i32_0 : i32, i32, i32
  }
}

</mosaic_0001>

<bundles_post_ra>
// kernel: tpu_custom_call.1
= control target key start
LH: loop header
LB: loop body
LE: loop exit
PB: predicated region body
PF: predicated region fallthrough
CT: control target
= control target key end

     0   :  { %11 = vsyncpa [#allocation8], 0  ;;  %s1975_s0 = inlined_call_operand.vmem [shape: f32[6,2,32], index: 0, kind: input, shape index: {}]   ;;  %s1976_s1 = inlined_call_operand.vmem [shape: f32[6,2,1], index: 1, kind: input, shape index: {}]   ;;  %s1977_s2 = inlined_call_operand.vmem [shape: f32[2,8,32], index: 2, kind: input, shape index: {}]   ;;  %s1978_s3 = inlined_call_operand.vmem [shape: f32[2,8], index: 3, kind: input, shape index: {}]   ;;  %s1979_s4 = inlined_call_operand.hbm [shape: f32[176,128], index: 4, kind: input, shape index: {}]   ;;  %s1980_s5 = inlined_call_operand.vmem [shape: f32[104,32], index: 5, kind: input, shape index: {}]   ;;  %s1981_s6 = inlined_call_operand.hbm [shape: f32[6,2,128], index: 6, kind: output, shape index: {}]  }
   0x1   :  { %12 = vsyncpa [#allocation9], 0 }
   0x2   :  { %14 = vsyncpa [#allocation9 + $0x1], 0  ;;  %s1671_s21 = smov 0   ;;  %s1673_s22 = smov 0  }
   0x3   :  { %s1675_s23 = smov 0   ;;  %s1677_s24 = smov 0  }
   0x4 LB: > { %s1692_s25 = sadd.s32 4294967295, %s1621_s24   ;;  %s1225_s26 = sadd.s32 4294967294, %s1621_s24   ;;  %s1621_s24 = sphi %s1677_s24, %s1998_s24   ;;  %s1617_s23 = sphi %s1675_s23, %s1997_s23   ;;  %s1613_s22 = sphi %s1673_s22, %s1996_s22   ;;  %s1609_s21 = sphi %s1671_s21, %s1995_s21  }
   0x5   : > { %s1696_s27 = sadd.s32 1, %s1621_s24   ;;  %s163_s28 = sadd.s32 1, %s1617_s23 }
   0x6   : > { %s160_s29 = ssub.s32 %s1621_s24, %s1696_s27  ;;  %p173_p0 = scmp.ne.s32.totalorder %s1617_s23, %s1613_s22 }
   0x7   : > { %p161_p1 = scmp.eq.s32.totalorder %s160_s29, 0  ;;  %p174_p2 = scmp.eq.s32.totalorder %s1692_s25, 5 }
   0x8   : > { %p179_p3 = scmp.ne.s32.totalorder %s1613_s22, %s1609_s21  ;;  %p180_p4 = scmp.eq.s32.totalorder %s1225_s26, 5 }
   0x9   : > { %s1707_s30 = scalar_select %p161_p1, %s1617_s23, %s163_s28  }
   0xa   : > { %p1709_p5 = por %p174_p2, %p173_p0  ;;  %p1713_p6 = por %p180_p4, %p179_p3 }
   0xb   : > { %p1226_p7 = scmp.ge.s32.totalorder %s1621_s24, 1  ;;  %p187_p8 = scmp.lt.s32.totalorder %s1621_s24, 7 }
   0xc   : > { %s1985_s7 = scalar_select %p1709_p5, 1, 0 }
   0xd   : > { %s1986_s8 = scalar_select %p1713_p6, 1, 0 }
   0xe   : > { %p1982_p10 = scmp.eq.s32.totalorder %s1692_s25, 0  ;;  %p1721_p11 = pnand %p1226_p7, %p187_p8 }
   0xf   : > { %s1623_s10 = smov [#allocation7]   ;;  %s1527_s15 = scalar_lea.hbm %s1979_s4, 2816 }
  0x10   : > { %s1987_s9 = scalar_select %p1721_p11, 1, 0 }
  0x11   : > { %s205_s11 = sshll.u32 %s1623_s10, 4  ;;  %p1448_p12 = pneg %p1721_p11  ;;  %s206_s11 = int_to_ptr.vmem [resolvable:$true] %s205_s11 }
  0x12   : > { %p1528_p0 = scmp.ne.s32.totalorder %s1979_s4, %s1527_s15  ;;  %p1534_p4 = scmp.lt.u32.totalorder %s1527_s15, %s1979_s4 }
  0x13   : > { %p1729_p13 = pnand %p1982_p10, %p1448_p12 }
  0x15   : > { %p1529_p1 = pneg %p1729_p13 }
  0x17   : > { %p1530_p2 = pnand %p1529_p1, %p1528_p0 }
  0x19   : > { %p1531_p3 = pneg %p1530_p2 }
  0x1b   : > { %p1536_p7 = pnand %p1534_p4, %p1531_p3 }
  0x1d   : > { %1539 = shalt.err (!%p1536_p7)
}
  0x1e   : > { %s1540_s20 = scalar_lea.vmem %s206_s11, 2816  ;;  %p1548_p10 = scmp.lt.s32.totalorder %s206_s11, %s206_s11 }
  0x1f   : > { %p1541_p8 = scmp.ne.s32.totalorder %s206_s11, %s1540_s20  ;;  %p1549_p6 = scmp.lt.s32.totalorder %s1540_s20, %s1540_s20 }
  0x21   : > { %p1543_p12 = pnand %p1541_p8, %p1529_p1  ;;  %p1550_p5 = por %p1549_p6, %p1548_p10 }
  0x23   : > { %p1544_p9 = pneg %p1543_p12 }
  0x25   : > { %p1551_p11 = pnand %p1550_p5, %p1544_p9 }
  0x27   : > { %1554 = shalt.err (!%p1551_p11)
}
  0x28   : > { %s1624_s26 = smov 128   ;;  %s1625_s28 = smov 8  }
  0x29   : > { %1451 = dma.hbm_to_vmem [thread:$0]  (!%p1729_p13), %s1979_s4, 2816, %s206_s11, [#allocation8], %s1624_s26, %s1624_s26, %s1625_s28  }
  0x2a   : > { %p1989_p0 = scmp.ne.s32.totalorder %s1987_s9, 0 }
  0x2b   : > { %p1990_p2 = scmp.eq.s32.totalorder (!%p1989_p0), %s1692_s25, 0 }
  0x2c   : > { %238 = sbr.rel (%p1989_p0) target bundleno = 2930 (0xb72), region = 44 }
  0x33   : > { %1600 = dma.done.wait (%p1990_p2), [#allocation8], 2816   ;;  %p1991_p1 = pmov %p1990_p2 }
  0x34   : > { %s268_s13 = sand.u32 1, %s1613_s22   ;;  %p271_p5 = scmp.lt.s32.totalorder %s1692_s25, 5 }
  0x35   : > { %1602 = vsyncadd (%p1991_p1), [#allocation8], 4294964480  ;;  %s1759_s12 = sshll.u32 %s268_s13, 1  ;;  %p1992_p6 = scmp.ne.s32.totalorder %s1692_s25, 0 }
  0x36   : > { %s272_s11 = scalar_select %p271_p5, %s1692_s25, 5 }
  0x37   : > { %s270_s20 = scalar_lea.vmem [#allocation10], %s1759_s12  ;;  %282 = sbr.rel (%p1992_p6) target bundleno = 62 (0x3e), region = 52  ;;  %vm283_vm0 = vcmask (!%p1992_p6), 254976   ;;  %v1626_v0 = vmov (!%p1992_p6), 0.0  }
  0x38   : > { %s1232_s14 = sshll.u32 %s272_s11, 1  ;;  %284 = vst.msk [vmem:[#allocation2] sm:$0x3] (!%p1992_p6), %vm283_vm0, %v1626_v0  ;;  %285 = vst.msk [vmem:[#allocation3] sm:$0x3] (!%p1992_p6), %vm283_vm0, %v1626_v0 }
  0x39   : > { %s1765_s16 = scalar_lea.vmem %s1975_s0, %s1232_s14  ;;  %s1770_s19 = scalar_lea.vmem %s1976_s1, %s1232_s14  ;;  %286 = vst.msk [vmem:[#allocation4] sm:$0x3] (!%p1992_p6), %vm283_vm0, %v1626_v0  ;;  %287 = vst.msk [vmem:[#allocation5] sm:$0x3] (!%p1992_p6), %vm283_vm0, %v1626_v0 }
  0x3a   : > { %288 = vst.msk [vmem:[#allocation6] sm:$0x3] (!%p1992_p6), %vm283_vm0, %v1626_v0 }
  0x3e PF: > { %s1627_s26 = smov 32   ;;  %v301_v2 = vld [vmem:[#allocation7] sm:$0xff]  ;;  %v302_v3 = vld [vmem:[#allocation7 + $0x8] sm:$0xff]  ;;  %v303_v4 = vld [vmem:[#allocation7 + $0x10] sm:$0xff]  ;;  %v1628_v6 = vmov 0.0|0.0   ;;  %vm1629_vm1 = vmmov 0  }
  0x3f   : > { %v296_v5 = vld [vmem:[#allocation2] sm:$0x3]  ;;  %1394 = vmatprep.subr.bf16.mxu0 %v1628_v6  ;;  %v1395_v7 = vpack.c.bf16 %v302_v3, %v301_v2  ;;  %v304_v8 = vld [vmem:[#allocation7 + $0x18] sm:$0xff]  ;;  %1412 = vmatprep.subr.bf16.mxu1 %v1628_v6  ;;  %v1630_v9 = vmov 0.0   ;;  %s1631_s28 = smov 64   ;;  %v305_v11 = vld [vmem:[#allocation7 + $0x20] sm:$0xff] }
  0x40   : > { %1322 = vmatprep.mubr.msk.f32.mxu0 %vm1629_vm1, %v1630_v9  ;;  %1341 = vmatprep.mubr.msk.f32.mxu1 %vm1629_vm1, %v1630_v9  ;;  %v1398_v10 = vpack.c.bf16 %v304_v8, %v303_v4  ;;  %v306_v12 = vld [vmem:[#allocation7 + $0x28] sm:$0xff]  ;;  %v307_v14 = vld [vmem:[#allocation7 + $0x30] sm:$0xff]  ;;  %v308_v15 = vld [vmem:[#allocation7 + $0x38] sm:$0xff]  ;;  %vm322_vm2 = vcmask 261120   ;;  %vm324_vm3 = vcmask 523264   ;;  %vm330_vm4 = vcmask 785408  }
  0x41   : > { %v300_v1 = vld [vmem:[#allocation6] sm:$0x3]  ;;  %1396 = vmatpush3.bf16.msra.mxu0 %v1395_v7  ;;  %v1401_v13 = vpack.c.bf16 %v306_v12, %v305_v11  ;;  %v1404_v16 = vpack.c.bf16 %v308_v15, %v307_v14  ;;  %v309_v17 = vld [vmem:[#allocation7 + $0x40] sm:$0xff]  ;;  %v310_v18 = vld [vmem:[#allocation7 + $0x48] sm:$0xff]  ;;  %v1632_v37 = vmov 0   ;;  %vm816_vm5 = vcmask 1041409  }
  0x42   : > { %315 = vrot.lane.b32.xlu0 %v300_v1, %s1627_s26  ;;  %1397 = vmatprep.subr.bf16.mxu0 %v1628_v6  ;;  %v1407_v19 = vpack.c.bf16 %v310_v18, %v309_v17  ;;  %v311_v20 = vld [vmem:[#allocation7 + $0x50] sm:$0xff]  ;;  %v312_v21 = vld [vmem:[#allocation7 + $0x58] sm:$0xff]  ;;  %v1235_v28 = vld [vmem:[#allocation7 + $0x60] ss:$0 sm:$0xff]  ;;  %vm820_vm7 = vcmask 58368   ;;  %vm856_vm8 = vcmask 64512  }
  0x43   : > { %v1410_v22 = vpack.c.bf16 %v312_v21, %v311_v20  ;;  %v289_v24 = vld [vmem:[%s1765_s16] sm:$0x3]  ;;  %v297_v33 = vld [vmem:[#allocation3] sm:$0x3]  ;;  %1503 = vset.pattern.permute.xlu1 %v1632_v37  ;;  %1504 = vset.pattern.permute.xlu0 %v1632_v37  ;;  %v435_v48 = vld [vmem:[#allocation7 + $0x80] sm:$0xff]  ;;  %s1634_s9 = smov 96  }
  0x44   : > { %v290_v38 = vld [vmem:[%s1770_s19] sm:$0x3]  ;;  %v434_v47 = vld [vmem:[#allocation7 + $0x78] sm:$0xff]  ;;  %v436_v50 = vld [vmem:[#allocation7 + $0x88] sm:$0xff]  ;;  %vm1102_vm9 = vcmask 254976   ;;  %s1142_s10 = sshll.u32 %s270_s20, 4  ;;  %s1931_s10 = int_to_ptr.vmem [resolvable:$true] %s1142_s10 }
  0x45   : > { %1399 = vmatpush3.bf16.msra.mxu0 %v1398_v10  ;;  %v433_v46 = vld [vmem:[#allocation7 + $0x70] sm:$0xff]  ;;  %v1416_v51 = vpack.c.bf16 %v436_v50, %v435_v48  ;;  %v438_v53 = vld [vmem:[#allocation7 + $0x98] sm:$0xff]  ;;  %v439_v56 = vld [vmem:[#allocation7 + $0xa0] sm:$0xff]  ;;  %vm1125_vm10 = vcmask 588800   ;;  %s1555_s15 = scalar_lea.vmem %s1931_s10, 32  ;;  %p1993_p10 = scmp.ne.s32.totalorder %s1985_s7, 0 }
  0x46   : > { %319 = vrot.lane.b32.xlu0 %v296_v5, %s1631_s28  ;;  %1400 = vmatprep.subr.bf16.mxu0 %v1628_v6  ;;  %v1413_v49 = vpack.c.bf16 %v434_v47, %v433_v46  ;;  %v437_v52 = vld [vmem:[#allocation7 + $0x90] sm:$0xff]  ;;  %v440_v57 = vld [vmem:[#allocation7 + $0xa8] sm:$0xff]  ;;  %v298_v58 = vld [vmem:[#allocation4] sm:$0x3]  ;;  %p1556_p9 = scmp.ne.s32.totalorder %s1931_s10, %s1555_s15  ;;  %s1635_s16 = smov [#allocation10]  }
  0x47   : > { %v1419_v54 = vpack.c.bf16 %v438_v53, %v437_v52  ;;  %v1422_v59 = vpack.c.bf16 %v440_v57, %v439_v56  ;;  %v299_v60 = vld [vmem:[#allocation5] sm:$0x3]  ;;  %v1238_v4 = vld [vmem:[#allocation7 + $0x68] ss:$0 sm:$0xff] }
  0x48   : > { %1414 = vmatpush3.bf16.msra.mxu1 %v1413_v49  ;;  %v560_v21 = vld [vmem:[%s1980_s5] sm:$0xff]  ;;  %p1557_p11 = pnand %p1556_p9, %p1993_p10 }
  0x49   : > { %1402 = vmatpush3.bf16.msra.mxu0 %v1401_v13  ;;  %1415 = vmatprep.subr.bf16.mxu1 %v1628_v6  ;;  %v559_v49 = vld [vmem:[%s1978_s3] sm:$0x3] }
  0x4a   : > { %1403 = vmatprep.subr.bf16.mxu0 %v1628_v6  ;;  %vm812_vm6 = vcmp.gt.f32.partialorder %v559_v49, 0.0  ;;  %p1558_p13 = pneg %p1557_p11 }
  0x4c   : > { %1417 = vmatpush3.bf16.msra.mxu1 %v1416_v51 }
  0x4d   : > { %1405 = vmatpush3.bf16.msra.mxu0 %v1404_v16  ;;  %1418 = vmatprep.subr.bf16.mxu1 %v1628_v6 }
  0x4e   : > { %1406 = vmatprep.subr.bf16.mxu0 %v1628_v6 }
  0x50   : > { %1420 = vmatpush3.bf16.msra.mxu1 %v1419_v54 }
  0x51   : > { %1408 = vmatpush3.bf16.msra.mxu0 %v1407_v19  ;;  %1421 = vmatprep.subr.bf16.mxu1 %v1628_v6 }
  0x52   : > { %1409 = vmatprep.subr.bf16.mxu0 %v1628_v6 }
  0x54   : > { %1423 = vmatpush3.bf16.msra.mxu1 %v1422_v59 }
  0x55   : > { %1411 = vmatpush3.bf16.msra.mxu0 %v1410_v22  ;;  %1424 = vmatprep.subr.bf16.mxu1 %v1628_v6  ;;  %v561_v22 = vld [vmem:[%s1980_s5 + $0x8] sm:$0xff] }
  0x56   : > { %1430 = vmatprep.subr.bf16.mxu0 %v1628_v6 }
  0xb4   : > { %v316_v23 = vpop.permute.xlu0 %315 }
  0xb5   : > { %v323_v25 = vsel %vm322_vm2, %v289_v24, %v316_v23  ;;  %v562_v23 = vld [vmem:[%s1980_s5 + $0x10] sm:$0xff]  ;;  %v1425_v24 = vpack.c.bf16 %v561_v22, %v560_v21 }
  0xb8   : > { %v320_v26 = vpop.permute.xlu0 %319 }
  0xb9   : > { %v325_v27 = vsel %vm324_vm3, %v323_v25, %v320_v26  ;;  %v563_v25 = vld [vmem:[%s1980_s5 + $0x18] sm:$0xff] }
  0xba   : > { %1323 = vmatmul.mubr.msk.f32.vlgmr.msra.gmra.mrb[0].mxu0 %vm330_vm4, %v325_v27  ;;  %v1428_v26 = vpack.c.bf16 %v563_v25, %v562_v23 }
  0xbb   : > { %1391 = vmatprep.mubr.msk.f32.mxu0 %vm1629_vm1, %v1630_v9 }
 0x18d   : > { %v400_v29 = vpop.f32.mrb[0].mxu0 }
 0x18e   : > { %v401_v30 = vadd.f32 %v1235_v28, %v400_v29  ;;  %v1324_v31 = vpop.f32.mrb[1].mxu0 }
 0x190   : > { %1505 = vtanh.f32 %v401_v30  ;;  %v1237_v34 = vmul.f32 -1.442695, %v401_v30 }
 0x192   : > { %1507 = vpow2.f32 %v1237_v34 }
 0x19a   : > { %v1506_v32 = vpop.eup %1505 }
 0x19b   : > { %417 = vrot.lane.b32.xlu1 %v1506_v32, %s1631_s28  ;;  %v557_v32 = vld [vmem:[%s1977_s2] sm:$0xff] }
 0x19c   : > { %v1508_v35 = vpop.eup %1507 }
 0x19d   : > { %v407_v36 = vadd.f32 1.0, %v1508_v35  ;;  %v643_v35 = vlaneseq }
 0x19f   : > { %412 = vrot.lane.b32.xlu1 %v297_v33, %s1627_s26  ;;  %1509 = vrcp.f32 %v407_v36  ;;  %v1633_v33 = vmov 1966171168   ;;  %v644_v37 = vshrl.u32 %v643_v35, 7 }
 0x1a0   : > { %v641_v34 = vunpack.c.l.s4 %v1633_v33 }
 0x1a2   : > { %v642_v36 = vunpack.c.0.s8 %v641_v34 }
 0x1a3   : > { %293 = vperm.xlu1 %1503, %v290_v38  }
 0x1a4   : > { %v645_v38 = vsub.s32 %v642_v36, %v644_v37 }
 0x1a9   : > { %v1510_v39 = vpop.eup %1509 }
 0x20d   : > { %v418_v40 = vpop.permute.xlu1 %417 }
 0x20e   : > { %v420_v41 = vmul.f32 %v1510_v39, %v418_v40 }
 0x210   : > { %422 = vrot.lane.b32.xlu0 %v420_v41, %s1627_s26 }
 0x211   : > { %v413_v42 = vpop.permute.xlu1 %412 }
 0x212   : > { %v415_v43 = vmul.f32 %v1510_v39, %v413_v42 }
 0x222   : > { %v1808_v62 = vpop.permute.xlu1 %293 }
 0x282   : > { %v423_v44 = vpop.permute.xlu0 %422 }
 0x283   : > { %v1798_v45 = vadd.f32 %v423_v44, %v415_v43  ;;  %v558_v44 = vld [vmem:[%s1977_s2 + $0x8] sm:$0xff] }
 0x285   : > { %1511 = vtanh.f32 %v1798_v45 }
 0x28f   : > { %v1512_v55 = vpop.eup %1511 }
 0x290   : > { %428 = vrot.lane.b32.xlu0 %v1512_v55, %s1631_s28 }
 0x294   : > { %447 = vrot.lane.b32.xlu0 %v298_v58, %s1627_s26 }
 0x298   : > { %536 = vrot.lane.b32.xlu0 %v299_v60, %s1627_s26 }
 0x302   : > { %v429_v61 = vpop.permute.xlu0 %428 }
 0x303   : > { %v1810_v63 = vmul.f32 %v1510_v39, %v429_v61 }
 0x305   : > { %v432_v0 = vmul.f32 %v1810_v63, %v1808_v62 }
 0x306   : > { %v448_v1 = vpop.permute.xlu0 %447 }
 0x307   : > { %443 = vrot.lane.b32.xlu1 %v432_v0, %s1627_s26 }
 0x30a   : > { %v537_v17 = vpop.permute.xlu0 %536 }
 0x379   : > { %v444_v2 = vpop.permute.xlu1 %443 }
 0x37a   : > { %v450_v3 = vsel %vm322_vm2, %v444_v2, %v448_v1 }
 0x37b   : > { %1342 = vmatmul.mubr.msk.f32.vlgmr.msra.gmra.mrb[0].mxu1 %vm324_vm3, %v450_v3 }
 0x37c   : > { %1352 = vmatprep.mubr.msk.f32.mxu1 %vm1629_vm1, %v1630_v9  ;;  %1426 = vmatpush3.bf16.msra.mxu1 %v1425_v24 }
 0x37d   : > { %1427 = vmatprep.subr.bf16.mxu1 %v1628_v6 }
 0x380   : > { %1429 = vmatpush3.bf16.msra.mxu1 %v1428_v26 }
 0x381   : > { %1355 = vmatprep.subr.mxu1 %v1630_v9 }
 0x44e   : > { %v524_v5 = vpop.f32.mrb[0].mxu1 }
 0x44f   : > { %v525_v7 = vadd.f32 %v1238_v4, %v524_v5  ;;  %v1343_v8 = vpop.f32.mrb[1].mxu1 }
 0x450   : > { %v1001_v8 = vld [vmem:[%s1980_s5 + $0x20] sm:$0xff] }
 0x451   : > { %1513 = vtanh.f32 %v525_v7  ;;  %v1240_v11 = vmul.f32 -1.442695, %v525_v7 }
 0x453   : > { %1515 = vpow2.f32 %v1240_v11 }
 0x45b   : > { %v1514_v10 = vpop.eup %1513 }
 0x45c   : > { %541 = vrot.lane.b32.xlu1 %v1514_v10, %s1631_s28  ;;  %v1002_v10 = vld [vmem:[%s1980_s5 + $0x28] sm:$0xff] }
 0x45d   : > { %v1516_v12 = vpop.eup %1515  ;;  %v1431_v11 = vpack.c.bf16 %v1002_v10, %v1001_v8 }
 0x45e   : > { %v531_v13 = vadd.f32 1.0, %v1516_v12 }
 0x45f   : > { %1432 = vmatpush3.bf16.msra.mxu0 %v1431_v11 }
 0x460   : > { %1517 = vrcp.f32 %v531_v13  ;;  %1433 = vmatprep.subr.bf16.mxu0 %v1628_v6  ;;  %v1005_v13 = vld [vmem:[%s1980_s5 + $0x40] sm:$0xff] }
 0x46a   : > { %v1518_v14 = vpop.eup %1517 }
 0x46b   : > { %v539_v18 = vmul.f32 %v1518_v14, %v537_v17  ;;  %v1008_v17 = vld [vmem:[%s1980_s5 + $0x58] sm:$0xff] }
 0x4ce   : > { %v542_v15 = vpop.permute.xlu1 %541 }
 0x4cf   : > { %v544_v16 = vmul.f32 %v1518_v14, %v542_v15 }
 0x4d1   : > { %546 = vrot.lane.b32.xlu1 %v544_v16, %s1627_s26  ;;  %v1007_v16 = vld [vmem:[%s1980_s5 + $0x50] sm:$0xff] }
 0x543   : > { %v547_v19 = vpop.permute.xlu1 %546 }
 0x544   : > { %v1821_v20 = vadd.f32 %v547_v19, %v539_v18  ;;  %v1440_v19 = vpack.c.bf16 %v1008_v17, %v1007_v16 }
 0x546   : > { %1519 = vtanh.f32 %v1821_v20 }
 0x550   : > { %v1520_v27 = vpop.eup %1519 }
 0x551   : > { %552 = vrot.lane.b32.xlu0 %v1520_v27, %s1631_s28 }
 0x5c3   : > { %v553_v28 = vpop.permute.xlu0 %552 }
 0x5c4   : > { %v1839_v29 = vmul.f32 %v1518_v14, %v553_v28  ;;  %v1006_v14 = vld [vmem:[%s1980_s5 + $0x48] sm:$0xff] }
 0x5c5   : > { %v1437_v15 = vpack.c.bf16 %v1006_v14, %v1005_v13 }
 0x5c6   : > { %v556_v30 = vmul.f32 %v1839_v29, %v1808_v62 }
 0x5c8   : > { %565 = vrot.lane.b32.xlu1 %v556_v30, %s1627_s26 }
 0x63a   : > { %v1844_v31 = vpop.permute.xlu1 %565 }
 0x63b   : > { %1353 = vmatmul.mubr.msk.f32.vlgmr.msra.gmra.mrb[2].mxu1 %vm322_vm2, %v1844_v31 }
 0x63c   : > { %1357 = vmatprep.mubr.msk.f32.mxu1 %vm1629_vm1, %v1630_v9  ;;  %1356 = vmatpush3.xpose.msk.msra.mxu1 %vm322_vm2, %v557_v32 }
 0x63d   : > { %1360 = vmatprep.subr.mxu1 %v1630_v9 }
 0x70e   : > { %v635_v39 = vpop.f32.mrb[2].mxu1 }
 0x70f   : > { %v646_v40 = vrot.slane %v635_v39, %v645_v38  ;;  %v1354_v41 = vpop.f32.mrb[3].mxu1 }
 0x711   : > { %v647_v42 = vcombine.high %v646_v40, %v646_v40  ;;  %v654_v43 = vrot.slane %v646_v40, %v645_v38 }
 0x713   : > { %1358 = vmatmul.mubr.msk.f32.vlgmr.msra.gmra.mrb[4].mxu1 %vm322_vm2, %v654_v43  ;;  %v661_v46 = vrot.slane %v647_v42, %v645_v38 }
 0x714   : > { %1361 = vmatpush3.xpose.msk.msra.mxu1 %vm322_vm2, %v558_v44  ;;  %1362 = vmatprep.mubr.msk.f32.mxu1 %vm1629_vm1, %v1630_v9 }
 0x715   : > { %1365 = vmatprep.subr.mxu1 %v1630_v9 }
 0x717   : > { %1363 = vmatmul.mubr.msk.f32.vlgmr.msra.gmra.mrb[6].mxu1 %vm322_vm2, %v661_v46 }
 0x718   : > { %1366 = vmatpush3.msra.mxu1 %v557_v32  ;;  %1367 = vmatprep.mubr.msk.f32.mxu1 %vm1629_vm1, %v1630_v9 }
 0x719   : > { %1370 = vmatprep.subr.mxu1 %v1630_v9 }
 0x7e6   : > { %v733_v47 = vpop.f32.mrb[4].mxu1 }
 0x7e7   : > { %v1359_v48 = vpop.f32.mrb[5].mxu1 }
 0x7ea   : > { %v808_v50 = vpop.f32.mrb[6].mxu1 }
 0x7eb   : > { %v815_v51 = vrot.slane %v808_v50, 7  ;;  %v1364_v52 = vpop.f32.mrb[7].mxu1 }
 0x7ed   : > { %v817_v53 = vsel %vm816_vm5, %v815_v51, %v733_v47 }
 0x7ee   : > { %v819_v54 = vsel %vm812_vm6, %v817_v53, -1e+30 }
 0x7ef   : > { %v821_v55 = vsel %vm820_vm7, %v819_v54, -inf }
 0x7f0   : > { %822 = vmax.xlane.f32.xlu0 %v821_v55 }
 0x87d   : > { %v823_v56 = vpop.xlane.xlu0 %822 }
 0x87e   : > { %v824_v57 = vsub.f32 %v819_v54, %v823_v56 }
 0x880   : > { %v825_v58 = vmul.f32 1.442695, %v824_v57 }
 0x882   : > { %1521 = vpow2.f32 %v825_v58 }
 0x88c   : > { %v1522_v59 = vpop.eup %1521 }
 0x88d   : > { %v827_v60 = vmul.f32 %v1522_v59, %v559_v49 }
 0x88f   : > { %v828_v61 = vsel %vm820_vm7, %v827_v60, 0.0 }
 0x890   : > { %829 = vadd.xlane.f32.xlu1 %v828_v61 }
 0x91d   : > { %v830_v0 = vpop.xlane.xlu1 %829 }
 0x91e   : > { %1523 = vrcp.f32 %v830_v0 }
 0x928   : > { %v1524_v1 = vpop.eup %1523 }
 0x929   : > { %v832_v2 = vmul.f32 %v1524_v1, %v827_v60 }
 0x92b   : > { %1120 = vrot.lane.b32.xlu1 %v832_v2, %s1631_s28  ;;  %v840_v3 = vrot.slane %v832_v2, %v645_v38  ;;  %s1559_s28 = sshll.u32 %s1635_s16, 4  ;;  %s1560_s28 = int_to_ptr.vmem [resolvable:$false] %s1559_s28 }
 0x92c   : > { %s1561_s17 = scalar_lea.vmem %s1560_s28, 64  ;;  %p1562_p3 = scmp.lt.s32.totalorder %s1931_s10, %s1560_s28 }
 0x92d   : > { %v841_v4 = vcombine.high %v840_v3, %v840_v3  ;;  %v848_v5 = vrot.slane %v840_v3, %v645_v38  ;;  %p1563_p4 = scmp.lt.s32.totalorder %s1561_s17, %s1555_s15 }
 0x92f   : > { %1105 = vrot.lane.b32.xlu1 %v1798_v45, %s1634_s9  ;;  %1368 = vmatmul.mubr.msk.f32.vlgmr.msra.gmra.mrb[8].mxu1 %vm856_vm8, %v848_v5  ;;  %v855_v7 = vrot.slane %v841_v4, %v645_v38  ;;  %v1003_v45 = vld [vmem:[%s1980_s5 + $0x30] sm:$0xff]  ;;  %p1564_p7 = por %p1563_p4, %p1562_p3 }
 0x930   : > { %1371 = vmatpush3.msra.mxu1 %v558_v44  ;;  %1372 = vmatprep.mubr.msk.f32.mxu1 %vm1629_vm1, %v1630_v9  ;;  %v1004_v9 = vld [vmem:[%s1980_s5 + $0x38] sm:$0xff] }
 0x931   : > { %v1434_v12 = vpack.c.bf16 %v1004_v9, %v1003_v45  ;;  %p1565_p8 = pnand %p1564_p7, %p1558_p13 }
 0x933   : > { %1115 = vrot.lane.b32.xlu1 %v1821_v20, %s1634_s9  ;;  %1373 = vmatmul.mubr.msk.f32.vlgmr.msra.gmra.mrb[10].mxu1 %vm856_vm8, %v855_v7 }
 0x934   : > { %1435 = vmatpush3.bf16.msra.mxu0 %v1434_v12 }
 0x935   : > { %1436 = vmatprep.subr.bf16.mxu0 %v1628_v6 }
 0x938   : > { %1438 = vmatpush3.bf16.msra.mxu0 %v1437_v15 }
 0x939   : > { %1439 = vmatprep.subr.bf16.mxu0 %v1628_v6 }
 0x93c   : > { %1441 = vmatpush3.bf16.msra.mxu0 %v1440_v19 }
 0x99d   : > { %v1121_v18 = vpop.permute.xlu1 %1120 }
 0x9a1   : > { %v1106_v20 = vpop.permute.xlu1 %1105 }
 0x9a2   : > { %1108 = vst.msk [vmem:[#allocation3] sm:$0x3] %vm1102_vm9, %v1106_v20 }
 0x9a5   : > { %v1116_v21 = vpop.permute.xlu1 %1115 }
 0x9a6   : > { %1118 = vst.msk [vmem:[#allocation5] sm:$0x3] %vm1102_vm9, %v1116_v21 }
 0xa02   : > { %v925_v22 = vpop.f32.mrb[8].mxu1 }
 0xa03   : > { %v1369_v23 = vpop.f32.mrb[9].mxu1 }
 0xa06   : > { %v997_v24 = vpop.f32.mrb[10].mxu1 }
 0xa07   : > { %v1013_v25 = vrot.slane %v997_v24, 7  ;;  %v1374_v26 = vpop.f32.mrb[11].mxu1 }
 0xa09   : > { %v1014_v27 = vsel %vm816_vm5, %v1013_v25, %v925_v22 }
 0xa0a   : > { %1015 = vrot.lane.b32.xlu0 %v1014_v27, %s1627_s26 }
 0xa0e   : > { %1099 = vrot.lane.b32.xlu0 %v1810_v63, %s1627_s26  ;;  %v1248_v63 = vld [vmem:[%s1980_s5 + $0x60] ss:$0 sm:$0xff] }
 0xa12   : > { %1110 = vrot.lane.b32.xlu0 %v1839_v29, %s1627_s26  ;;  %s1251_s26 = sshll.u32 %s1692_s25, 5  ;;  %s1129_s25 = scalar_lea.sflag [#allocation9], %s268_s13 }
 0xa13   : > { %s1929_s9 = scalar_lea.hbm %s1981_s6, %s1251_s26 }
 0xa7c   : > { %v1016_v6 = vpop.permute.xlu0 %1015 }
 0xa7d   : > { %v1018_v28 = vsel %vm322_vm2, %v1844_v31, %v1016_v6 }
 0xa7e   : > { %1392 = vmatmul.mubr.msk.f32.vlgmr.msra.gmra.mrb[2].mxu0 %vm324_vm3, %v1018_v28 }
 0xa80   : > { %v1100_v30 = vpop.permute.xlu0 %1099 }
 0xa81   : > { %1103 = vst.msk [vmem:[#allocation2] sm:$0x3] %vm1102_vm9, %v1100_v30 }
 0xa84   : > { %v1111_v32 = vpop.permute.xlu0 %1110 }
 0xa85   : > { %1113 = vst.msk [vmem:[#allocation4] sm:$0x3] %vm1102_vm9, %v1111_v32 }
 0xb51   : > { %v1092_v33 = vpop.f32.mrb[2].mxu0 }
 0xb52   : > { %v1093_v29 = vadd.f32 %v1248_v63, %v1092_v33  ;;  %v1393_v34 = vpop.f32.mrb[3].mxu0 }
 0xb54   : > { %1525 = vtanh.f32 %v1093_v29 }
 0xb5e   : > { %v1526_v31 = vpop.eup %1525 }
 0xb5f   : > { %v1097_v35 = vmul.f32 %v1526_v31, %v1808_v62 }
 0xb61   : > { %1119 = vst.msk [vmem:[#allocation6] sm:$0x3] %vm1102_vm9, %v1097_v35  ;;  %v1123_v36 = vsel %vm322_vm2, %v1097_v35, %v1016_v6 }
 0xb62   : > { %v1124_v37 = vsel %vm324_vm3, %v1123_v36, %v1121_v18 }
 0xb63   : > { %v1126_v62 = vsel %vm1125_vm10, %v1124_v37, 0.0 }
 0xb64   : > { %1127 = vst [vmem:[%s270_s20] sm:$0x3] %v1126_v62 }
 0xb65   : > { %1568 = shalt.err (!%p1565_p8)
}
 0xb66   : > { %s1569_s13 = scalar_lea.hbm %s1929_s9, 32  ;;  %s1573_s18 = scalar_lea.hbm %s1981_s6, 192 }
 0xb67   : > { %p1570_p12 = scmp.ne.s32.totalorder %s1929_s9, %s1569_s13  ;;  %p1574_p1 = scmp.lt.u32.totalorder %s1929_s9, %s1981_s6 }
 0xb68   : > { %p1575_p5 = scmp.lt.u32.totalorder %s1573_s18, %s1569_s13  ;;  %p1577_p9 = scmp.lt.u32.totalorder %s1569_s13, %s1929_s9 }
 0xb69   : > { %p1571_p0 = pnand %p1570_p12, %p1993_p10 }
 0xb6a   : > { %p1576_p6 = por %p1575_p5, %p1574_p1 }
 0xb6b   : > { %p1572_p2 = pneg %p1571_p0 }
 0xb6c   : > { %p1578_p11 = por %p1577_p9, %p1576_p6 }
 0xb6e   : > { %p1579_p13 = pnand %p1578_p11, %p1572_p2 }
 0xb70   : > { %1582 = shalt.err (!%p1579_p13)
}
 0xb71   : > { %1446 = dma.vmem_to_hbm [thread:$0]  (%p1993_p10), %s1931_s10, 32, %s1929_s9, %s1129_s25  }
 0xb72 PF: > { %p1458_p3 = scmp.ge.s32.totalorder %s1621_s24, 2  ;;  %s1154_s26 = sand.u32 1, %s1609_s21  }
 0xb73   : > { %p1994_p4 = scmp.ne.s32.totalorder %s1986_s8, 0  ;;  %s1155_s11 = scalar_lea.sflag [#allocation9], %s1154_s26 }
 0xb75   : > { %p1453_p7 = pnand %p1458_p3, %p1994_p4 }
 0xb77   : > { %1604 = dma.done.wait (!%p1453_p7), %s1155_s11, 32  }
 0xb78   : > { %1606 = vsyncadd (!%p1453_p7), %s1155_s11, 4294967264  ;;  %p17_p8 = scmp.ge.s32.totalorder %s1696_s27, 8   ;;  %s1995_s21 = smov %s1613_s22 }
 0xb79   : > { %s1996_s22 = smov %s1617_s23  ;;  %s1997_s23 = smov %s1707_s30 }
 0xb7a   : > { %s1998_s24 = smov %s1696_s27  ;;  %19 = sbr.rel (!%p17_p8) target bundleno = 4 (0x4), region = 91 }
 0xb81   :  { %1160 = vsyncpa [#allocation8], 1 }
 0xb82   :  { %1162 = vsyncpa [#allocation8 + $0x1], 1 }
 0xb83   :  { %1163 = vsyncpa [#allocation9], 1 }
 0xb84   :  { %1165 = vsyncpa [#allocation9 + $0x1], 1 }

</bundles_post_ra>
